<compile_context>
chip_gen: v7x
topology: tpu7x:2x2x1
jax: 0.10.0
libtpu: 0.0.40
codegen_flags: <defaults>
</compile_context>

<pallas_src>
import functools

import jax
import jax.numpy as jnp
from jax.experimental import pallas as pl
from jax.experimental.pallas import tpu as pltpu

SUBLANE = 8
LANE = 128
HIDDEN = 128


def _round_up(n, m):
    return ((n + m - 1) // m) * m


def _cdiv(a, b):
    return -(-a // b)


def dqn_kernel(x_ref, w_ref, b_ref, o_ref, *, k_pad, hidden):
    cd = w_ref.dtype

    # Layer 1: Linear(num_inputs, 128) + ReLU. K is tiny (padded to 8), so this
    # MXU pass is mostly padding; the real contraction work is layers 2/3.
    # (A v5e VPU broadcast-FMA alternative was judged minor — not implemented.)
    h1 = jnp.dot(x_ref[...], w_ref[0:k_pad, :],
                 preferred_element_type=jnp.float32)
    h1 = jnp.maximum(h1 + b_ref[0:1, :], 0.0)            # f32 bias+ReLU (VPU)

    # Layer 2: Linear(128, 128) + ReLU.
    h2 = jnp.dot(h1.astype(cd), w_ref[k_pad:k_pad + hidden, :],
                 preferred_element_type=jnp.float32)
    h2 = jnp.maximum(h2 + b_ref[1:2, :], 0.0)

    # Layer 3: Linear(128, out_padded) — Q-values, no activation.
    q = jnp.dot(h2.astype(cd), w_ref[k_pad + hidden:k_pad + 2 * hidden, :],
                preferred_element_type=jnp.float32)
    # TODO(synk): for large eval batches with tiny n_out, emit a bf16 output
    # or fuse the argmax/action-select here to shrink the padded writeback.
    o_ref[...] = (q + b_ref[2:3, :]).astype(o_ref.dtype)


def prepare_dqn_params(params, *, compute_dtype=jnp.bfloat16):
    """One-time packing: pad + cast weights/biases into two DMA-friendly slabs.

    Returns (w_slab, b_slab):
      w_slab: (K_pad + 2*hidden, hidden) compute_dtype  [w1_pad ; w2 ; w3_pad]
      b_slab: (3, hidden) float32                        [b1 ; b2 ; b3_pad]
    """
    w1, b1 = params["w1"], params["b1"]
    w2, b2 = params["w2"], params["b2"]
    w3, b3 = params["w3"], params["b3"]

    k, hidden = w1.shape
    n_out = w3.shape[1]
    assert w2.shape == (hidden, hidden)
    assert hidden == HIDDEN
    # TODO(synk): support num_outputs > 128 (would need a separate w3/b3 slab).
    assert n_out <= hidden

    k_pad = _round_up(k, SUBLANE)
    cd = compute_dtype

    w1_p = jnp.zeros((k_pad, hidden), cd).at[:k, :].set(w1.astype(cd))
    w3_p = jnp.zeros((hidden, hidden), cd).at[:, :n_out].set(w3.astype(cd))
    w_slab = jnp.concatenate([w1_p, w2.astype(cd), w3_p], axis=0)

    b3_p = jnp.zeros((1, hidden), jnp.float32).at[:, :n_out].set(
        b3.astype(jnp.float32))
    b_slab = jnp.concatenate(
        [b1.astype(jnp.float32), b2.astype(jnp.float32), b3_p], axis=0)
    return w_slab, b_slab


@functools.partial(jax.jit, static_argnames=("num_outputs", "tm"))
def dqn_forward(x, w_slab, b_slab, *, num_outputs, tm=512):
    """x: (B, num_inputs); w_slab/b_slab from prepare_dqn_params()."""
    B, K = x.shape
    hidden = w_slab.shape[1]
    k_pad = w_slab.shape[0] - 2 * hidden
    assert K <= k_pad
    cd = w_slab.dtype

    # Batch padded only to a sublane multiple; grid covers it with cdiv
    # (partial last block is handled by Pallas read padding / write masking).
    B_pad = _round_up(B, SUBLANE)
    tm = max(SUBLANE, min(_round_up(tm, SUBLANE), B_pad))
    # v7x megacore: keep >=2 grid steps when the batch is big enough so the
    # "parallel" axis actually shards across both TensorCores. For small
    # batches a single step avoids pure per-step overhead on v5e/v6e (1 TC).
    if B_pad >= 64 and _cdiv(B_pad, tm) == 1:
        tm = _round_up(_cdiv(B_pad, 2), SUBLANE)
    grid = _cdiv(B_pad, tm)

    x_p = jnp.pad(x.astype(cd), ((0, B_pad - B), (0, k_pad - K)))

    kernel = functools.partial(dqn_kernel, k_pad=k_pad, hidden=hidden)
    # Constant index_map -> slabs DMA'd once, VMEM-resident across batch tiles.
    const = lambda a: pl.BlockSpec(a.shape, lambda i: (0, 0))

    out = pl.pallas_call(
        kernel,
        out_shape=jax.ShapeDtypeStruct((B_pad, hidden), jnp.float32),
        grid=(grid,),
        in_specs=[
            pl.BlockSpec((tm, k_pad), lambda i: (i, 0)),   # x: tiled over batch
            const(w_slab),
            const(b_slab),
        ],
        out_specs=pl.BlockSpec((tm, hidden), lambda i: (i, 0)),
        compiler_params=pltpu.CompilerParams(
            dimension_semantics=("parallel",)),            # megacore on v7x
    )(x_p, w_slab, b_slab)

    return out[:B, :num_outputs]
    # TODO(synk): for tight RL action-selection loops (B<=32), keep the weight
    # slab resident across calls via the cross-call semaphore/VMEM-ref
    # prefetch pattern (P10) instead of re-DMAing it every forward.


def init_dqn_params(key, num_inputs, num_outputs, hidden=HIDDEN):
    """Mimics nn.Linear's U(-1/sqrt(fan_in), 1/sqrt(fan_in)); weights stored (in, out)."""
    ks = jax.random.split(key, 6)

    def linear(kw, kb, fan_in, fan_out):
        bound = 1.0 / jnp.sqrt(jnp.float32(fan_in))
        w = jax.random.uniform(kw, (fan_in, fan_out), jnp.float32, -bound, bound)
        b = jax.random.uniform(kb, (1, fan_out), jnp.float32, -bound, bound)
        return w, b

    w1, b1 = linear(ks[0], ks[1], num_inputs, hidden)
    w2, b2 = linear(ks[2], ks[3], hidden, hidden)
    w3, b3 = linear(ks[4], ks[5], hidden, num_outputs)
    return {"w1": w1, "b1": b1, "w2": w2, "b2": b2, "w3": w3, "b3": b3}


def dqn_reference(x, p):
    h1 = jnp.maximum(x @ p["w1"] + p["b1"], 0.0)
    h2 = jnp.maximum(h1 @ p["w2"] + p["b2"], 0.0)
    return h2 @ p["w3"] + p["b3"]


if __name__ == "__main__":
    # Small shapes consistent with a typical DQN (e.g. CartPole): 4 state dims, 2 actions.
    batch, num_inputs, num_outputs = 2, 4, 2

    key = jax.random.PRNGKey(0)
    k_x, k_p, k_big, k_odd = jax.random.split(key, 4)
    x = jax.random.normal(k_x, (batch, num_inputs), jnp.float32)
    params = init_dqn_params(k_p, num_inputs, num_outputs)

    # One-time packing (both dtypes; bf16 is the production default).
    w_bf16, b_bf16 = prepare_dqn_params(params, compute_dtype=jnp.bfloat16)
    w_f32, b_f32 = prepare_dqn_params(params, compute_dtype=jnp.float32)

    ref = dqn_reference(x, params)

    # f32 compute path: tight tolerance.
    out_f32 = jax.block_until_ready(
        dqn_forward(x, w_f32, b_f32, num_outputs=num_outputs))
    assert out_f32.shape == (batch, num_outputs)
    assert jnp.allclose(out_f32, ref, atol=1e-5, rtol=1e-5), "f32 mismatch (B=2)"

    # bf16 compute path (default): looser tolerance.
    out_bf16 = jax.block_until_ready(
        dqn_forward(x, w_bf16, b_bf16, num_outputs=num_outputs))
    assert out_bf16.shape == (batch, num_outputs)
    assert jnp.allclose(out_bf16, ref, atol=5e-2, rtol=5e-2), "bf16 mismatch (B=2)"

    # Larger batch: exercises the >=2-grid-step split (B_pad=512 -> tm=256, grid=2).
    x_big = jax.random.normal(k_big, (512, num_inputs), jnp.float32)
    ref_big = dqn_reference(x_big, params)
    out_big = jax.block_until_ready(
        dqn_forward(x_big, w_bf16, b_bf16, num_outputs=num_outputs))
    assert out_big.shape == (512, num_outputs)
    assert jnp.allclose(out_big, ref_big, atol=5e-2, rtol=5e-2), "bf16 mismatch (B=512)"

    # Odd batch: exercises cdiv grid + partial last block masking (f32, tight tol).
    x_odd = jax.random.normal(k_odd, (130, num_inputs), jnp.float32)
    ref_odd = dqn_reference(x_odd, params)
    out_odd = jax.block_until_ready(
        dqn_forward(x_odd, w_f32, b_f32, num_outputs=num_outputs))
    assert out_odd.shape == (130, num_outputs)
    assert jnp.allclose(out_odd, ref_odd, atol=1e-5, rtol=1e-5), "f32 mismatch (B=130)"

    print("KERNEL_OK")
</pallas_src>

<mosaic_0001>
module attributes {stable_mosaic.version = 11 : i64} {
  func.func @dqn_kernel(%arg0: i32, %arg1: memref<8x8xf32, #tpu.memory_space<vmem>>, %arg2: memref<264x128xf32, #tpu.memory_space<vmem>>, %arg3: memref<3x128xf32, #tpu.memory_space<vmem>>, %arg4: memref<8x128xf32, #tpu.memory_space<vmem>>) attributes {dimension_semantics = [#tpu.dimension_semantics<parallel>], iteration_bounds = array<i64: 1>, scalar_prefetch = 0 : i64, scratch_operands = 0 : i64, tpu.core_type = #tpu.core_type<tc>, window_params = [{transform_indices = @transform_0, window_bounds = array<i64: 8, 8>}, {pipeline_mode = #tpu.pipeline_mode<synchronous>, transform_indices = @transform_1, window_bounds = array<i64: 264, 128>}, {pipeline_mode = #tpu.pipeline_mode<synchronous>, transform_indices = @transform_2, window_bounds = array<i64: 3, 128>}, {transform_indices = @transform_3, window_bounds = array<i64: 8, 128>}]} {
    %c0 = arith.constant 0 : index
    %c0_0 = arith.constant 0 : index
    %0 = vector.load %arg1[%c0, %c0_0] : memref<8x8xf32, #tpu.memory_space<vmem>>, vector<8x8xf32>
    %c0_1 = arith.constant 0 : index
    %c0_2 = arith.constant 0 : index
    %1 = vector.load %arg2[%c0_1, %c0_2] : memref<264x128xf32, #tpu.memory_space<vmem>>, vector<8x128xf32>
    %cst = arith.constant dense<0.000000e+00> : vector<8x128xf32>
    %2 = tpu.matmul %0, %1, %cst {dimension_numbers = #tpu.dot_dimension_numbers<[1], [0], [0], [1], [0, 0, 1, 1], [], []>} : vector<8x8xf32>, vector<8x128xf32>, vector<8x128xf32> -> vector<8x128xf32>
    %c0_3 = arith.constant 0 : index
    %c0_4 = arith.constant 0 : index
    %3 = vector.load %arg3[%c0_3, %c0_4] : memref<3x128xf32, #tpu.memory_space<vmem>>, vector<1x128xf32>
    %4 = vector.broadcast %3 : vector<1x128xf32> to vector<8x128xf32>
    %5 = arith.addf %2, %4 : vector<8x128xf32>
    %cst_5 = arith.constant 0.000000e+00 : f32
    %6 = vector.broadcast %cst_5 : f32 to vector<8x128xf32>
    %7 = arith.maximumf %5, %6 : vector<8x128xf32>
    %c8 = arith.constant 8 : index
    %c0_6 = arith.constant 0 : index
    %8 = vector.load %arg2[%c8, %c0_6] : memref<264x128xf32, #tpu.memory_space<vmem>>, vector<128x128xf32>
    %cst_7 = arith.constant dense<0.000000e+00> : vector<8x128xf32>
    %9 = tpu.matmul %7, %8, %cst_7 {dimension_numbers = #tpu.dot_dimension_numbers<[1], [0], [0], [1], [0, 0, 1, 1], [], []>} : vector<8x128xf32>, vector<128x128xf32>, vector<8x128xf32> -> vector<8x128xf32>
    %c1 = arith.constant 1 : index
    %c0_8 = arith.constant 0 : index
    %10 = vector.load %arg3[%c1, %c0_8] : memref<3x128xf32, #tpu.memory_space<vmem>>, vector<1x128xf32>
    %11 = vector.broadcast %10 : vector<1x128xf32> to vector<8x128xf32>
    %12 = arith.addf %9, %11 : vector<8x128xf32>
    %cst_9 = arith.constant 0.000000e+00 : f32
    %13 = vector.broadcast %cst_9 : f32 to vector<8x128xf32>
    %14 = arith.maximumf %12, %13 : vector<8x128xf32>
    %c136 = arith.constant 136 : index
    %c0_10 = arith.constant 0 : index
    %15 = vector.load %arg2[%c136, %c0_10] : memref<264x128xf32, #tpu.memory_space<vmem>>, vector<128x128xf32>
    %cst_11 = arith.constant dense<0.000000e+00> : vector<8x128xf32>
    %16 = tpu.matmul %14, %15, %cst_11 {dimension_numbers = #tpu.dot_dimension_numbers<[1], [0], [0], [1], [0, 0, 1, 1], [], []>} : vector<8x128xf32>, vector<128x128xf32>, vector<8x128xf32> -> vector<8x128xf32>
    %c2 = arith.constant 2 : index
    %c0_12 = arith.constant 0 : index
    %17 = vector.load %arg3[%c2, %c0_12] : memref<3x128xf32, #tpu.memory_space<vmem>>, vector<1x128xf32>
    %18 = vector.broadcast %17 : vector<1x128xf32> to vector<8x128xf32>
    %19 = arith.addf %16, %18 : vector<8x128xf32>
    %c0_13 = arith.constant 0 : index
    %c0_14 = arith.constant 0 : index
    %20 = vector.load %arg4[%c0_13, %c0_14] : memref<8x128xf32, #tpu.memory_space<vmem>>, vector<8x128xf32>
    tpu.vector_store %arg4[%c0_13, %c0_14], %19 {strides = array<i32>} : memref<8x128xf32, #tpu.memory_space<vmem>>, vector<8x128xf32>,
    return
  }
  func.func @transform_0(%arg0: i32) -> (i32, i32) {
    %c0_i32 = arith.constant 0 : i32
    %c0_i32_0 = arith.constant 0 : i32
    return %arg0, %c0_i32 : i32, i32
  }
  func.func @transform_1(%arg0: i32) -> (i32, i32) {
    %c0_i32 = arith.constant 0 : i32
    %c0_i32_0 = arith.constant 0 : i32
    %c0_i32_1 = arith.constant 0 : i32
    return %c0_i32, %c0_i32_0 : i32, i32
  }
  func.func @transform_2(%arg0: i32) -> (i32, i32) {
    %c0_i32 = arith.constant 0 : i32
    %c0_i32_0 = arith.constant 0 : i32
    %c0_i32_1 = arith.constant 0 : i32
    return %c0_i32, %c0_i32_0 : i32, i32
  }
  func.func @transform_3(%arg0: i32) -> (i32, i32) {
    %c0_i32 = arith.constant 0 : i32
    %c0_i32_0 = arith.constant 0 : i32
    return %arg0, %c0_i32 : i32, i32
  }
}

</mosaic_0001>

<bundles_post_ra>
// kernel: dqn_forward.1
= control target key start
LH: loop header
LB: loop body
LE: loop exit
PB: predicated region body
PF: predicated region fallthrough
CT: control target
= control target key end

     0   :  { %8 = vsyncpa [#allocation3], 0  ;;  %s492_s12 = smov [#allocation2]   ;;  %s564_s0 = inlined_call_operand.vmem [shape: f32[8,8], index: 0, kind: input, shape index: {}]   ;;  %s565_s1 = inlined_call_operand.hbm [shape: f32[264,128], index: 1, kind: input, shape index: {}]   ;;  %s566_s2 = inlined_call_operand.vmem [shape: f32[3,128], index: 2, kind: input, shape index: {}]   ;;  %s567_s3 = inlined_call_operand.vmem [shape: f32[8,128], index: 3, kind: output, shape index: {}]  }
   0x1   :  { %s16_s13 = sshll.u32 %s492_s12, 4  ;;  %s468_s16 = scalar_lea.hbm %s565_s1, 4224  ;;  %s17_s13 = int_to_ptr.vmem [resolvable:$true] %s16_s13 }
   0x2   :  { %p469_p0 = scmp.ne.s32.totalorder %s565_s1, %s468_s16  ;;  %p472_p1 = scmp.lt.u32.totalorder %s468_s16, %s565_s1 }
   0x4   :  { %p474_p2 = pnand %p472_p1, %p469_p0 }
   0x6   :  { %477 = shalt.err (!%p474_p2)
}
   0x7   :  { %s478_s21 = scalar_lea.vmem %s17_s13, 4224  ;;  %p483_p4 = scmp.lt.s32.totalorder %s17_s13, %s17_s13 }
   0x8   :  { %p479_p3 = scmp.ne.s32.totalorder %s17_s13, %s478_s21  ;;  %p484_p5 = scmp.lt.s32.totalorder %s478_s21, %s478_s21 }
   0xa   :  { %p485_p6 = por %p484_p5, %p483_p4 }
   0xc   :  { %p486_p7 = pnand %p485_p6, %p479_p3 }
   0xe   :  { %489 = shalt.err (!%p486_p7)
}
   0xf   :  { %s493_s22 = smov 128   ;;  %s494_s23 = smov 8  }
  0x10   :  { %22 = dma.hbm_to_vmem [thread:$0]  %s565_s1, 4224, %s17_s13, [#allocation3], %s493_s22, %s493_s22, %s494_s23  }
  0x11   :  { %490 = dma.done.wait [#allocation3], 4224  }
  0x12   :  { %491 = vsyncadd [#allocation3], 4294963072  ;;  %v495_v0 = vmov 0.0   ;;  %vm496_vm0 = vmmov 0   ;;  %v497_v1 = vmov 0.0|0.0   ;;  %vm35_vm1 = vcmask 64512  }
  0x13   :  { %339 = vmatprep.subr.mxu0 %v495_v0  ;;  %341 = vmatprep.mubr.msk.f32.mxu0 %vm496_vm0, %v495_v0  ;;  %v29_v2 = vld [vmem:[#allocation2] sm:$0xff]  ;;  %v110_v4 = vld [vmem:[#allocation2 + $0x8] sm:$0xff]  ;;  %v111_v5 = vld [vmem:[#allocation2 + $0x10] sm:$0xff] }
  0x14   :  { %414 = vmatprep.subr.bf16.mxu1 %v497_v1  ;;  %376 = vmatprep.mubr.msk.f32.mxu1 %vm496_vm0, %v495_v0  ;;  %v28_v3 = vld [vmem:[%s564_s0] sm:$0xff]  ;;  %v112_v6 = vld [vmem:[#allocation2 + $0x18] sm:$0xff]  ;;  %v415_v8 = vpack.c.bf16 %v111_v5, %v110_v4  ;;  %v114_v10 = vld [vmem:[#allocation2 + $0x28] sm:$0xff] }
  0x15   :  { %340 = vmatpush3.msra.mxu0 %v29_v2  ;;  %v113_v7 = vld [vmem:[#allocation2 + $0x20] sm:$0xff]  ;;  %v115_v11 = vld [vmem:[#allocation2 + $0x30] sm:$0xff]  ;;  %v116_v13 = vld [vmem:[#allocation2 + $0x38] sm:$0xff] }
  0x16   :  { %342 = vmatmul.mubr.msk.f32.vlgmr.msra.gmra.mrb[0].mxu0 %vm35_vm1, %v28_v3  ;;  %438 = vmatprep.subr.bf16.mxu0 %v497_v1  ;;  %v418_v9 = vpack.c.bf16 %v113_v7, %v112_v6  ;;  %v421_v12 = vpack.c.bf16 %v115_v11, %v114_v10  ;;  %v117_v14 = vld [vmem:[#allocation2 + $0x40] sm:$0xff]  ;;  %v118_v16 = vld [vmem:[#allocation2 + $0x48] sm:$0xff]  ;;  %v119_v17 = vld [vmem:[#allocation2 + $0x50] sm:$0xff] }
  0x17   :  { %411 = vmatprep.mubr.msk.f32.mxu0 %vm496_vm0, %v495_v0  ;;  %416 = vmatpush3.bf16.msra.mxu1 %v415_v8  ;;  %v424_v15 = vpack.c.bf16 %v117_v14, %v116_v13  ;;  %v427_v18 = vpack.c.bf16 %v119_v17, %v118_v16  ;;  %v120_v19 = vld [vmem:[#allocation2 + $0x58] sm:$0xff]  ;;  %v121_v20 = vld [vmem:[#allocation2 + $0x60] sm:$0xff]  ;;  %v122_v22 = vld [vmem:[#allocation2 + $0x68] sm:$0xff] }
  0x18   :  { %417 = vmatprep.subr.bf16.mxu1 %v497_v1  ;;  %v430_v21 = vpack.c.bf16 %v121_v20, %v120_v19  ;;  %v123_v23 = vld [vmem:[#allocation2 + $0x70] sm:$0xff]  ;;  %v124_v25 = vld [vmem:[#allocation2 + $0x78] sm:$0xff]  ;;  %v125_v26 = vld [vmem:[#allocation2 + $0x80] sm:$0xff] }
  0x19   :  { %v433_v24 = vpack.c.bf16 %v123_v23, %v122_v22  ;;  %v436_v27 = vpack.c.bf16 %v125_v26, %v124_v25  ;;  %v202_v28 = vld [vmem:[#allocation2 + $0x88] sm:$0xff]  ;;  %v203_v29 = vld [vmem:[#allocation2 + $0x90] sm:$0xff]  ;;  %v204_v30 = vld [vmem:[#allocation2 + $0x98] sm:$0xff] }
  0x1a   :  { %v439_v31 = vpack.c.bf16 %v203_v29, %v202_v28  ;;  %v205_v32 = vld [vmem:[#allocation2 + $0xa0] sm:$0xff]  ;;  %v206_v34 = vld [vmem:[#allocation2 + $0xa8] sm:$0xff]  ;;  %v207_v35 = vld [vmem:[#allocation2 + $0xb0] sm:$0xff] }
  0x1b   :  { %419 = vmatpush3.bf16.msra.mxu1 %v418_v9  ;;  %v442_v33 = vpack.c.bf16 %v205_v32, %v204_v30  ;;  %v445_v36 = vpack.c.bf16 %v207_v35, %v206_v34  ;;  %v208_v37 = vld [vmem:[#allocation2 + $0xb8] sm:$0xff]  ;;  %v209_v38 = vld [vmem:[#allocation2 + $0xc0] sm:$0xff]  ;;  %v210_v40 = vld [vmem:[#allocation2 + $0xc8] sm:$0xff] }
  0x1c   :  { %420 = vmatprep.subr.bf16.mxu1 %v497_v1  ;;  %440 = vmatpush3.bf16.msra.mxu0 %v439_v31  ;;  %v448_v39 = vpack.c.bf16 %v209_v38, %v208_v37  ;;  %v211_v41 = vld [vmem:[#allocation2 + $0xd0] sm:$0xff]  ;;  %v212_v43 = vld [vmem:[#allocation2 + $0xd8] sm:$0xff]  ;;  %v213_v44 = vld [vmem:[#allocation2 + $0xe0] sm:$0xff] }
  0x1d   :  { %441 = vmatprep.subr.bf16.mxu0 %v497_v1  ;;  %v451_v42 = vpack.c.bf16 %v211_v41, %v210_v40  ;;  %v454_v45 = vpack.c.bf16 %v213_v44, %v212_v43  ;;  %v214_v46 = vld [vmem:[#allocation2 + $0xe8] sm:$0xff]  ;;  %v215_v47 = vld [vmem:[#allocation2 + $0xf0] sm:$0xff]  ;;  %v299_v49 = vld [vmem:[%s566_s2] ss:$0 sm:$0xff] }
  0x1e   :  { %v457_v48 = vpack.c.bf16 %v215_v47, %v214_v46  ;;  %v216_v54 = vld [vmem:[#allocation2 + $0xf8] sm:$0xff]  ;;  %v217_v55 = vld [vmem:[#allocation2 + $0x100] sm:$0xff] }
  0x1f   :  { %422 = vmatpush3.bf16.msra.mxu1 %v421_v12  ;;  %v460_v56 = vpack.c.bf16 %v217_v55, %v216_v54  ;;  %v301_v57 = vld [vmem:[%s566_s2 + $0x1] ss:$0 sm:$0xff]  ;;  %v302_v62 = vld [vmem:[%s566_s2 + $0x2] ss:$0 sm:$0xff] }
  0x20   :  { %423 = vmatprep.subr.bf16.mxu1 %v497_v1  ;;  %443 = vmatpush3.bf16.msra.mxu0 %v442_v33 }
  0x21   :  { %444 = vmatprep.subr.bf16.mxu0 %v497_v1 }
  0x23   :  { %425 = vmatpush3.bf16.msra.mxu1 %v424_v15 }
  0x24   :  { %426 = vmatprep.subr.bf16.mxu1 %v497_v1  ;;  %446 = vmatpush3.bf16.msra.mxu0 %v445_v36 }
  0x25   :  { %447 = vmatprep.subr.bf16.mxu0 %v497_v1 }
  0x27   :  { %428 = vmatpush3.bf16.msra.mxu1 %v427_v18 }
  0x28   :  { %429 = vmatprep.subr.bf16.mxu1 %v497_v1  ;;  %449 = vmatpush3.bf16.msra.mxu0 %v448_v39 }
  0x29   :  { %450 = vmatprep.subr.bf16.mxu0 %v497_v1 }
  0x2b   :  { %431 = vmatpush3.bf16.msra.mxu1 %v430_v21 }
  0x2c   :  { %432 = vmatprep.subr.bf16.mxu1 %v497_v1  ;;  %452 = vmatpush3.bf16.msra.mxu0 %v451_v42 }
  0x2d   :  { %453 = vmatprep.subr.bf16.mxu0 %v497_v1 }
  0x2f   :  { %434 = vmatpush3.bf16.msra.mxu1 %v433_v24 }
  0x30   :  { %435 = vmatprep.subr.bf16.mxu1 %v497_v1  ;;  %455 = vmatpush3.bf16.msra.mxu0 %v454_v45 }
  0x31   :  { %456 = vmatprep.subr.bf16.mxu0 %v497_v1 }
  0x33   :  { %437 = vmatpush3.bf16.msra.mxu1 %v436_v27 }
  0x34   :  { %458 = vmatpush3.bf16.msra.mxu0 %v457_v48 }
  0x35   :  { %459 = vmatprep.subr.bf16.mxu0 %v497_v1 }
  0x38   :  { %461 = vmatpush3.bf16.msra.mxu0 %v460_v56 }
  0xe9   :  { %v105_v50 = vpop.f32.mrb[0].mxu0 }
  0xea   :  { %v106_v51 = vadd.f32 %v299_v49, %v105_v50  ;;  %v343_v52 = vpop.f32.mrb[1].mxu0 }
  0xec   :  { %v109_v53 = vmax.f32 %v106_v51, 0.0 }
  0xee   :  { %377 = vmatmul.mubr.f32.vlgmr.msra.gmra.mrb[0].mxu1 %v109_v53 }
 0x1c1   :  { %v197_v58 = vpop.f32.mrb[0].mxu1 }
 0x1c2   :  { %v198_v59 = vadd.f32 %v301_v57, %v197_v58  ;;  %v378_v60 = vpop.f32.mrb[1].mxu1 }
 0x1c4   :  { %v201_v61 = vmax.f32 %v198_v59, 0.0 }
 0x1c6   :  { %412 = vmatmul.mubr.f32.vlgmr.msra.gmra.mrb[2].mxu0 %v201_v61 }
 0x299   :  { %v289_v63 = vpop.f32.mrb[2].mxu0 }
 0x29a   :  { %v290_v0 = vadd.f32 %v302_v62, %v289_v63  ;;  %v413_v1 = vpop.f32.mrb[3].mxu0 }
 0x29c   :  { %293 = vst [vmem:[%s567_s3] sm:$0xff] %v290_v0 }
 0x29d   :  { %298 = vsyncpa [#allocation3], 1 }

</bundles_post_ra>
